<compile_context>
chip_gen: v5e
topology: v5e:2x2
jax: 0.10.0
libtpu: 0.0.40
codegen_flags: <defaults>
</compile_context>

<pallas_src>
import functools

import jax
import jax.numpy as jnp
from jax import lax
from jax.experimental import pallas as pl
from jax.experimental.pallas import tpu as pltpu


def attention_kernel(x_ref, wqkv_ref, bqkv_ref, wout_ref, bout_ref, o_ref,
                     qkv_ref, hout_ref, *, heads, dim_head, eps):
    # x block: (1, N, D)
    x = x_ref[0].astype(jnp.float32)                                   # (N, D)
    dh = dim_head
    inner = heads * dh

    # ---- LayerNorm statistics in f32 (gamma/beta already folded into the
    #      QKV weight/bias by the wrapper) ----
    mean = jnp.mean(x, axis=-1, keepdims=True)
    var = jnp.mean((x - mean) ** 2, axis=-1, keepdims=True)
    x_hat = (x - mean) * lax.rsqrt(var + eps)                          # (N, D)

    # ---- single fused QKV projection: bf16 MXU operands, f32 accumulate ----
    # Columns are [Q_all | K_all | V_all]; softmax scale pre-folded into Q.
    qkv = jnp.dot(x_hat.astype(jnp.bfloat16), wqkv_ref[...],
                  preferred_element_type=jnp.float32) + bqkv_ref[...]  # (N, 3*inner)
    # Park in VMEM scratch as bf16: bounds the live range across the head
    # loop and is already the MXU operand dtype for the per-head matmuls.
    qkv_ref[...] = qkv.astype(jnp.bfloat16)

    # Static per-head loop; only per-head temporaries are live values.
    for h in range(heads):
        q = qkv_ref[:, 0 * inner + h * dh:0 * inner + (h + 1) * dh]    # (N, Dh) bf16
        k = qkv_ref[:, 1 * inner + h * dh:1 * inner + (h + 1) * dh]
        v = qkv_ref[:, 2 * inner + h * dh:2 * inner + (h + 1) * dh]

        # q @ k^T without materializing k.T (contract the lane dim of both).
        dots = lax.dot_general(q, k, (((1,), (1,)), ((), ())),
                               preferred_element_type=jnp.float32)     # (N, N) f32
        m = jnp.max(dots, axis=-1, keepdims=True)
        e = jnp.exp(dots - m)                                          # f32 (EUP)
        denom = jnp.sum(e, axis=-1, keepdims=True)                     # (N, 1)

        # Deferred softmax normalization: scale the (N, Dh) PV result instead
        # of the (N, N) probabilities; reciprocal goes to the EUP slot.
        pv = jnp.dot(e.astype(jnp.bfloat16), v,
                     preferred_element_type=jnp.float32)               # (N, Dh)
        out_h = pv * pl.reciprocal(denom, approx=True)
        # dropout p=0.0 -> identity

        # Merge-heads = write this head's lane slice of the (N, inner) slab.
        hout_ref[:, h * dh:(h + 1) * dh] = out_h.astype(jnp.bfloat16)

    # ---- one full-width output projection (K = inner) on the MXU ----
    o = jnp.dot(hout_ref[...], wout_ref[...],
                preferred_element_type=jnp.float32)                    # (N, D)
    o_ref[0] = (o + bout_ref[...]).astype(o_ref.dtype)


def vit_attention(x, gamma, beta, w_qkv, w_out, b_out, *, heads, dim_head,
                  eps=1e-5):
    B, N, D = x.shape
    dh = dim_head
    inner = heads * dh
    scale = dh ** -0.5

    # ------------------------------------------------------------------
    # One-time weight preprocessing (in a real model this is cached with the
    # parameters, not done per call).  Folds are done in f32, then operands
    # are cast to bf16 for the MXU.
    #   (x_hat*gamma + beta) @ W  ==  x_hat @ (gamma[:,None]*W) + beta @ W
    # ------------------------------------------------------------------
    g = gamma.reshape(D).astype(jnp.float32)
    bt = beta.reshape(D).astype(jnp.float32)
    w = w_qkv.astype(jnp.float32)                         # (D, 3*inner) [Q|K|V]

    w_g = g[:, None] * w                                  # gamma fold
    b_qkv = bt @ w                                        # beta fold -> (3*inner,)

    # Fold the softmax scale into the Q columns / Q bias.
    w_g = w_g.at[:, :inner].multiply(scale)
    b_qkv = b_qkv.at[:inner].multiply(scale)

    w_qkv_bf = w_g.astype(jnp.bfloat16)                   # (D, 3*inner)
    b_qkv_f32 = b_qkv.reshape(1, 3 * inner).astype(jnp.float32)
    w_out_bf = w_out.astype(jnp.bfloat16)                 # (inner, D)
    b_out_f32 = b_out.reshape(1, D).astype(jnp.float32)

    kernel = functools.partial(attention_kernel, heads=heads, dim_head=dh,
                               eps=eps)

    # Advisory cost hint for XLA's scheduler around the custom call.
    flops_per_b = (2 * N * D * 3 * inner          # QKV projection
                   + 4 * heads * N * N * dh       # QK^T + PV
                   + 2 * N * inner * D)           # output projection
    cost = pl.CostEstimate(
        flops=B * flops_per_b,
        transcendentals=B * heads * N * N,
        bytes_accessed=(B * N * D * x.dtype.itemsize * 2     # x in + out
                        + w_qkv_bf.size * 2 + w_out_bf.size * 2
                        + b_qkv_f32.size * 4 + b_out_f32.size * 4))

    # NOTE: the tiny demo D=32 under-fills lanes; real ViT dims (384/768/1024)
    # are multiples of 128 so the output store is lane-dense.
    return pl.pallas_call(
        kernel,
        out_shape=jax.ShapeDtypeStruct((B, N, D), x.dtype),
        grid_spec=pltpu.PrefetchScalarGridSpec(
            num_scalar_prefetch=0,
            grid=(B,),
            in_specs=[
                pl.BlockSpec((1, N, D), lambda b: (b, 0, 0)),            # x
                # Grid-invariant parameters: single-buffered (no double-buffer
                # VMEM waste, fetched once).
                pl.BlockSpec((D, 3 * inner), lambda b: (0, 0),
                             pipeline_mode=pl.Buffered(1)),              # W_qkv bf16
                pl.BlockSpec((1, 3 * inner), lambda b: (0, 0),
                             pipeline_mode=pl.Buffered(1)),              # b_qkv f32
                pl.BlockSpec((inner, D), lambda b: (0, 0),
                             pipeline_mode=pl.Buffered(1)),              # W_out bf16
                pl.BlockSpec((1, D), lambda b: (0, 0),
                             pipeline_mode=pl.Buffered(1)),              # b_out f32
            ],
            out_specs=pl.BlockSpec((1, N, D), lambda b: (b, 0, 0)),
            scratch_shapes=[
                pltpu.VMEM((N, 3 * inner), jnp.bfloat16),   # qkv slab
                pltpu.VMEM((N, inner), jnp.bfloat16),       # merged-heads slab
            ],
        ),
        compiler_params=pltpu.CompilerParams(
            dimension_semantics=("parallel",),      # batch axis feeds both TCs on v7x
            vmem_limit_bytes=48 * 1024 * 1024),     # above v5e/v6e defaults, < v7x 64 MiB
        cost_estimate=cost,
    )(x, w_qkv_bf, b_qkv_f32, w_out_bf, b_out_f32)


def vit_attention_ref(x, gamma, beta, w_qkv, w_out, b_out, *, heads, dim_head,
                      eps=1e-5):
    """Pure-JAX f32 reference mirroring the PyTorch forward."""
    B, N, D = x.shape
    inner = heads * dim_head
    mean = jnp.mean(x, axis=-1, keepdims=True)
    var = jnp.mean((x - mean) ** 2, axis=-1, keepdims=True)
    xn = (x - mean) * lax.rsqrt(var + eps) * gamma[0] + beta[0]
    qkv = xn @ w_qkv
    q, k, v = jnp.split(qkv, 3, axis=-1)

    def to_heads(t):
        return t.reshape(B, N, heads, dim_head).transpose(0, 2, 1, 3)

    q, k, v = map(to_heads, (q, k, v))
    dots = jnp.einsum('bhnd,bhmd->bhnm', q, k) * (dim_head ** -0.5)
    attn = jax.nn.softmax(dots, axis=-1)
    out = jnp.einsum('bhnm,bhmd->bhnd', attn, v)
    out = out.transpose(0, 2, 1, 3).reshape(B, N, inner)
    return out @ w_out + b_out[0]


if __name__ == "__main__":
    B, N, dim = 2, 8, 32
    heads, dim_head = 4, 16
    inner = heads * dim_head

    key = jax.random.PRNGKey(0)
    kx, kq, ko, kb, kg, kbt = jax.random.split(key, 6)

    x = jax.random.normal(kx, (B, N, dim), dtype=jnp.float32)
    # deterministic synthetic parameters (nn.Linear stored as (in, out) here)
    w_qkv = jax.random.normal(kq, (dim, 3 * inner), dtype=jnp.float32) * 0.05
    w_out = jax.random.normal(ko, (inner, dim), dtype=jnp.float32) * 0.05
    b_out = jax.random.normal(kb, (1, dim), dtype=jnp.float32) * 0.01
    gamma = 1.0 + 0.1 * jax.random.normal(kg, (1, dim), dtype=jnp.float32)
    beta = 0.1 * jax.random.normal(kbt, (1, dim), dtype=jnp.float32)

    out = vit_attention(x, gamma, beta, w_qkv, w_out, b_out,
                        heads=heads, dim_head=dim_head)
    out = jax.block_until_ready(out)

    ref = vit_attention_ref(x, gamma, beta, w_qkv, w_out, b_out,
                            heads=heads, dim_head=dim_head)
    assert out.shape == (B, N, dim)
    # bf16 MXU operands + approx reciprocal => compare against the f32
    # reference with a correspondingly loosened tolerance.
    assert jnp.allclose(out, ref, atol=2e-2, rtol=2e-2), \
        float(jnp.max(jnp.abs(out - ref)))

    print("KERNEL_OK")
</pallas_src>

<mosaic_0001>
module attributes {stable_mosaic.version = 11 : i64} {
  func.func @attention_kernel(%arg0: i32, %arg1: memref<1x8x32xf32, #tpu.memory_space<vmem>>, %arg2: memref<32x192xbf16, #tpu.memory_space<vmem>>, %arg3: memref<1x192xf32, #tpu.memory_space<vmem>>, %arg4: memref<64x32xbf16, #tpu.memory_space<vmem>>, %arg5: memref<1x32xf32, #tpu.memory_space<vmem>>, %arg6: memref<1x8x32xf32, #tpu.memory_space<vmem>>, %arg7: memref<8x192xbf16, #tpu.memory_space<vmem>>, %arg8: memref<8x64xbf16, #tpu.memory_space<vmem>>) attributes {dimension_semantics = [#tpu.dimension_semantics<parallel>], iteration_bounds = array<i64: 2>, scalar_prefetch = 0 : i64, scratch_operands = 2 : i64, tpu.core_type = #tpu.core_type<tc>, window_params = [{transform_indices = @transform_0, window_bounds = array<i64: 1, 8, 32>}, {pipeline_mode = #tpu.pipeline_mode<synchronous>, transform_indices = @transform_1, window_bounds = array<i64: 32, 192>}, {pipeline_mode = #tpu.pipeline_mode<synchronous>, transform_indices = @transform_2, window_bounds = array<i64: 1, 192>}, {pipeline_mode = #tpu.pipeline_mode<synchronous>, transform_indices = @transform_3, window_bounds = array<i64: 64, 32>}, {pipeline_mode = #tpu.pipeline_mode<synchronous>, transform_indices = @transform_4, window_bounds = array<i64: 1, 32>}, {transform_indices = @transform_5, window_bounds = array<i64: 1, 8, 32>}]} {
    %c0 = arith.constant 0 : index
    %c0_0 = arith.constant 0 : index
    %c0_1 = arith.constant 0 : index
    %0 = vector.load %arg1[%c0, %c0_0, %c0_1] : memref<1x8x32xf32, #tpu.memory_space<vmem>>, vector<1x8x32xf32>
    %1 = vector.shape_cast %0 : vector<1x8x32xf32> to vector<8x32xf32>
    %cst = arith.constant dense<0.000000e+00> : vector<8xf32>
    %2 = vector.multi_reduction <add>, %1, %cst [1] : vector<8x32xf32> to vector<8xf32>
    %3 = vector.shape_cast %2 : vector<8xf32> to vector<8x1xf32>
    %cst_2 = arith.constant 3.200000e+01 : f32
    %4 = vector.broadcast %cst_2 : f32 to vector<8x1xf32>
    %5 = arith.divf %3, %4 : vector<8x1xf32>
    %6 = vector.broadcast %5 : vector<8x1xf32> to vector<8x32xf32>
    %7 = arith.subf %1, %6 : vector<8x32xf32>
    %8 = arith.mulf %7, %7 : vector<8x32xf32>
    %cst_3 = arith.constant dense<0.000000e+00> : vector<8xf32>
    %9 = vector.multi_reduction <add>, %8, %cst_3 [1] : vector<8x32xf32> to vector<8xf32>
    %10 = vector.shape_cast %9 : vector<8xf32> to vector<8x1xf32>
    %cst_4 = arith.constant 3.200000e+01 : f32
    %11 = vector.broadcast %cst_4 : f32 to vector<8x1xf32>
    %12 = arith.divf %10, %11 : vector<8x1xf32>
    %13 = vector.broadcast %5 : vector<8x1xf32> to vector<8x32xf32>
    %14 = arith.subf %1, %13 : vector<8x32xf32>
    %cst_5 = arith.constant 9.99999974E-6 : f32
    %15 = vector.broadcast %cst_5 : f32 to vector<8x1xf32>
    %16 = arith.addf %12, %15 : vector<8x1xf32>
    %17 = math.rsqrt %16 : vector<8x1xf32>
    %18 = vector.broadcast %17 : vector<8x1xf32> to vector<8x32xf32>
    %19 = arith.mulf %14, %18 : vector<8x32xf32>
    %20 = arith.truncf %19 : vector<8x32xf32> to vector<8x32xbf16>
    %c0_6 = arith.constant 0 : index
    %c0_7 = arith.constant 0 : index
    %21 = vector.load %arg2[%c0_6, %c0_7] : memref<32x192xbf16, #tpu.memory_space<vmem>>, vector<32x192xbf16>
    %cst_8 = arith.constant dense<0.000000e+00> : vector<8x192xf32>
    %22 = tpu.matmul %20, %21, %cst_8 {dimension_numbers = #tpu.dot_dimension_numbers<[1], [0], [0], [1], [0, 0, 1, 1], [], []>} : vector<8x32xbf16>, vector<32x192xbf16>, vector<8x192xf32> -> vector<8x192xf32>
    %c0_9 = arith.constant 0 : index
    %c0_10 = arith.constant 0 : index
    %23 = vector.load %arg3[%c0_9, %c0_10] : memref<1x192xf32, #tpu.memory_space<vmem>>, vector<1x192xf32>
    %24 = vector.broadcast %23 : vector<1x192xf32> to vector<8x192xf32>
    %25 = arith.addf %22, %24 : vector<8x192xf32>
    %26 = arith.truncf %25 : vector<8x192xf32> to vector<8x192xbf16>
    %c0_11 = arith.constant 0 : index
    %c0_12 = arith.constant 0 : index
    %27 = vector.load %arg7[%c0_11, %c0_12] : memref<8x192xbf16, #tpu.memory_space<vmem>>, vector<8x192xbf16>
    tpu.vector_store %arg7[%c0_11, %c0_12], %26 {strides = array<i32>} : memref<8x192xbf16, #tpu.memory_space<vmem>>, vector<8x192xbf16>,
    %c0_13 = arith.constant 0 : index
    %c0_14 = arith.constant 0 : index
    %28 = vector.load %arg7[%c0_13, %c0_14] : memref<8x192xbf16, #tpu.memory_space<vmem>>, vector<8x16xbf16>
    %c0_15 = arith.constant 0 : index
    %c64 = arith.constant 64 : index
    %29 = vector.load %arg7[%c0_15, %c64] : memref<8x192xbf16, #tpu.memory_space<vmem>>, vector<8x16xbf16>
    %c0_16 = arith.constant 0 : index
    %c128 = arith.constant 128 : index
    %30 = vector.load %arg7[%c0_16, %c128] : memref<8x192xbf16, #tpu.memory_space<vmem>>, vector<8x16xbf16>
    %cst_17 = arith.constant dense<0.000000e+00> : vector<8x8xf32>
    %31 = tpu.matmul %28, %29, %cst_17 {dimension_numbers = #tpu.dot_dimension_numbers<[1], [1], [0], [0], [0, 0, 1, 0], [], []>} : vector<8x16xbf16>, vector<8x16xbf16>, vector<8x8xf32> -> vector<8x8xf32>
    %cst_18 = arith.constant dense<0xFF800000> : vector<8xf32>
    %32 = vector.multi_reduction <maximumf>, %31, %cst_18 [1] : vector<8x8xf32> to vector<8xf32>
    %33 = vector.shape_cast %32 : vector<8xf32> to vector<8x1xf32>
    %34 = vector.broadcast %33 : vector<8x1xf32> to vector<8x8xf32>
    %35 = arith.subf %31, %34 : vector<8x8xf32>
    %36 = math.exp %35 : vector<8x8xf32>
    %cst_19 = arith.constant dense<0.000000e+00> : vector<8xf32>
    %37 = vector.multi_reduction <add>, %36, %cst_19 [1] : vector<8x8xf32> to vector<8xf32>
    %38 = vector.shape_cast %37 : vector<8xf32> to vector<8x1xf32>
    %39 = arith.truncf %36 : vector<8x8xf32> to vector<8x8xbf16>
    %cst_20 = arith.constant dense<0.000000e+00> : vector<8x16xf32>
    %40 = tpu.matmul %39, %30, %cst_20 {dimension_numbers = #tpu.dot_dimension_numbers<[1], [0], [0], [1], [0, 0, 1, 1], [], []>} : vector<8x8xbf16>, vector<8x16xbf16>, vector<8x16xf32> -> vector<8x16xf32>
    %41 = tpu.reciprocal %38 {approx = true} : vector<8x1xf32> -> vector<8x1xf32>
    %42 = vector.broadcast %41 : vector<8x1xf32> to vector<8x16xf32>
    %43 = arith.mulf %40, %42 : vector<8x16xf32>
    %44 = arith.truncf %43 : vector<8x16xf32> to vector<8x16xbf16>
    %c0_21 = arith.constant 0 : index
    %c0_22 = arith.constant 0 : index
    %45 = vector.load %arg8[%c0_21, %c0_22] : memref<8x64xbf16, #tpu.memory_space<vmem>>, vector<8x16xbf16>
    tpu.vector_store %arg8[%c0_21, %c0_22], %44 {strides = array<i32>} : memref<8x64xbf16, #tpu.memory_space<vmem>>, vector<8x16xbf16>,
    %c0_23 = arith.constant 0 : index
    %c16 = arith.constant 16 : index
    %46 = vector.load %arg7[%c0_23, %c16] : memref<8x192xbf16, #tpu.memory_space<vmem>>, vector<8x16xbf16>
    %c0_24 = arith.constant 0 : index
    %c80 = arith.constant 80 : index
    %47 = vector.load %arg7[%c0_24, %c80] : memref<8x192xbf16, #tpu.memory_space<vmem>>, vector<8x16xbf16>
    %c0_25 = arith.constant 0 : index
    %c144 = arith.constant 144 : index
    %48 = vector.load %arg7[%c0_25, %c144] : memref<8x192xbf16, #tpu.memory_space<vmem>>, vector<8x16xbf16>
    %cst_26 = arith.constant dense<0.000000e+00> : vector<8x8xf32>
    %49 = tpu.matmul %46, %47, %cst_26 {dimension_numbers = #tpu.dot_dimension_numbers<[1], [1], [0], [0], [0, 0, 1, 0], [], []>} : vector<8x16xbf16>, vector<8x16xbf16>, vector<8x8xf32> -> vector<8x8xf32>
    %cst_27 = arith.constant dense<0xFF800000> : vector<8xf32>
    %50 = vector.multi_reduction <maximumf>, %49, %cst_27 [1] : vector<8x8xf32> to vector<8xf32>
    %51 = vector.shape_cast %50 : vector<8xf32> to vector<8x1xf32>
    %52 = vector.broadcast %51 : vector<8x1xf32> to vector<8x8xf32>
    %53 = arith.subf %49, %52 : vector<8x8xf32>
    %54 = math.exp %53 : vector<8x8xf32>
    %cst_28 = arith.constant dense<0.000000e+00> : vector<8xf32>
    %55 = vector.multi_reduction <add>, %54, %cst_28 [1] : vector<8x8xf32> to vector<8xf32>
    %56 = vector.shape_cast %55 : vector<8xf32> to vector<8x1xf32>
    %57 = arith.truncf %54 : vector<8x8xf32> to vector<8x8xbf16>
    %cst_29 = arith.constant dense<0.000000e+00> : vector<8x16xf32>
    %58 = tpu.matmul %57, %48, %cst_29 {dimension_numbers = #tpu.dot_dimension_numbers<[1], [0], [0], [1], [0, 0, 1, 1], [], []>} : vector<8x8xbf16>, vector<8x16xbf16>, vector<8x16xf32> -> vector<8x16xf32>
    %59 = tpu.reciprocal %56 {approx = true} : vector<8x1xf32> -> vector<8x1xf32>
    %60 = vector.broadcast %59 : vector<8x1xf32> to vector<8x16xf32>
    %61 = arith.mulf %58, %60 : vector<8x16xf32>
    %62 = arith.truncf %61 : vector<8x16xf32> to vector<8x16xbf16>
    %c0_30 = arith.constant 0 : index
    %c16_31 = arith.constant 16 : index
    %63 = vector.load %arg8[%c0_30, %c16_31] : memref<8x64xbf16, #tpu.memory_space<vmem>>, vector<8x16xbf16>
    tpu.vector_store %arg8[%c0_30, %c16_31], %62 {strides = array<i32>} : memref<8x64xbf16, #tpu.memory_space<vmem>>, vector<8x16xbf16>,
    %c0_32 = arith.constant 0 : index
    %c32 = arith.constant 32 : index
    %64 = vector.load %arg7[%c0_32, %c32] : memref<8x192xbf16, #tpu.memory_space<vmem>>, vector<8x16xbf16>
    %c0_33 = arith.constant 0 : index
    %c96 = arith.constant 96 : index
    %65 = vector.load %arg7[%c0_33, %c96] : memref<8x192xbf16, #tpu.memory_space<vmem>>, vector<8x16xbf16>
    %c0_34 = arith.constant 0 : index
    %c160 = arith.constant 160 : index
    %66 = vector.load %arg7[%c0_34, %c160] : memref<8x192xbf16, #tpu.memory_space<vmem>>, vector<8x16xbf16>
    %cst_35 = arith.constant dense<0.000000e+00> : vector<8x8xf32>
    %67 = tpu.matmul %64, %65, %cst_35 {dimension_numbers = #tpu.dot_dimension_numbers<[1], [1], [0], [0], [0, 0, 1, 0], [], []>} : vector<8x16xbf16>, vector<8x16xbf16>, vector<8x8xf32> -> vector<8x8xf32>
    %cst_36 = arith.constant dense<0xFF800000> : vector<8xf32>
    %68 = vector.multi_reduction <maximumf>, %67, %cst_36 [1] : vector<8x8xf32> to vector<8xf32>
    %69 = vector.shape_cast %68 : vector<8xf32> to vector<8x1xf32>
    %70 = vector.broadcast %69 : vector<8x1xf32> to vector<8x8xf32>
    %71 = arith.subf %67, %70 : vector<8x8xf32>
    %72 = math.exp %71 : vector<8x8xf32>
    %cst_37 = arith.constant dense<0.000000e+00> : vector<8xf32>
    %73 = vector.multi_reduction <add>, %72, %cst_37 [1] : vector<8x8xf32> to vector<8xf32>
    %74 = vector.shape_cast %73 : vector<8xf32> to vector<8x1xf32>
    %75 = arith.truncf %72 : vector<8x8xf32> to vector<8x8xbf16>
    %cst_38 = arith.constant dense<0.000000e+00> : vector<8x16xf32>
    %76 = tpu.matmul %75, %66, %cst_38 {dimension_numbers = #tpu.dot_dimension_numbers<[1], [0], [0], [1], [0, 0, 1, 1], [], []>} : vector<8x8xbf16>, vector<8x16xbf16>, vector<8x16xf32> -> vector<8x16xf32>
    %77 = tpu.reciprocal %74 {approx = true} : vector<8x1xf32> -> vector<8x1xf32>
    %78 = vector.broadcast %77 : vector<8x1xf32> to vector<8x16xf32>
    %79 = arith.mulf %76, %78 : vector<8x16xf32>
    %80 = arith.truncf %79 : vector<8x16xf32> to vector<8x16xbf16>
    %c0_39 = arith.constant 0 : index
    %c32_40 = arith.constant 32 : index
    %81 = vector.load %arg8[%c0_39, %c32_40] : memref<8x64xbf16, #tpu.memory_space<vmem>>, vector<8x16xbf16>
    tpu.vector_store %arg8[%c0_39, %c32_40], %80 {strides = array<i32>} : memref<8x64xbf16, #tpu.memory_space<vmem>>, vector<8x16xbf16>,
    %c0_41 = arith.constant 0 : index
    %c48 = arith.constant 48 : index
    %82 = vector.load %arg7[%c0_41, %c48] : memref<8x192xbf16, #tpu.memory_space<vmem>>, vector<8x16xbf16>
    %c0_42 = arith.constant 0 : index
    %c112 = arith.constant 112 : index
    %83 = vector.load %arg7[%c0_42, %c112] : memref<8x192xbf16, #tpu.memory_space<vmem>>, vector<8x16xbf16>
    %c0_43 = arith.constant 0 : index
    %c176 = arith.constant 176 : index
    %84 = vector.load %arg7[%c0_43, %c176] : memref<8x192xbf16, #tpu.memory_space<vmem>>, vector<8x16xbf16>
    %cst_44 = arith.constant dense<0.000000e+00> : vector<8x8xf32>
    %85 = tpu.matmul %82, %83, %cst_44 {dimension_numbers = #tpu.dot_dimension_numbers<[1], [1], [0], [0], [0, 0, 1, 0], [], []>} : vector<8x16xbf16>, vector<8x16xbf16>, vector<8x8xf32> -> vector<8x8xf32>
    %cst_45 = arith.constant dense<0xFF800000> : vector<8xf32>
    %86 = vector.multi_reduction <maximumf>, %85, %cst_45 [1] : vector<8x8xf32> to vector<8xf32>
    %87 = vector.shape_cast %86 : vector<8xf32> to vector<8x1xf32>
    %88 = vector.broadcast %87 : vector<8x1xf32> to vector<8x8xf32>
    %89 = arith.subf %85, %88 : vector<8x8xf32>
    %90 = math.exp %89 : vector<8x8xf32>
    %cst_46 = arith.constant dense<0.000000e+00> : vector<8xf32>
    %91 = vector.multi_reduction <add>, %90, %cst_46 [1] : vector<8x8xf32> to vector<8xf32>
    %92 = vector.shape_cast %91 : vector<8xf32> to vector<8x1xf32>
    %93 = arith.truncf %90 : vector<8x8xf32> to vector<8x8xbf16>
    %cst_47 = arith.constant dense<0.000000e+00> : vector<8x16xf32>
    %94 = tpu.matmul %93, %84, %cst_47 {dimension_numbers = #tpu.dot_dimension_numbers<[1], [0], [0], [1], [0, 0, 1, 1], [], []>} : vector<8x8xbf16>, vector<8x16xbf16>, vector<8x16xf32> -> vector<8x16xf32>
    %95 = tpu.reciprocal %92 {approx = true} : vector<8x1xf32> -> vector<8x1xf32>
    %96 = vector.broadcast %95 : vector<8x1xf32> to vector<8x16xf32>
    %97 = arith.mulf %94, %96 : vector<8x16xf32>
    %98 = arith.truncf %97 : vector<8x16xf32> to vector<8x16xbf16>
    %c0_48 = arith.constant 0 : index
    %c48_49 = arith.constant 48 : index
    %99 = vector.load %arg8[%c0_48, %c48_49] : memref<8x64xbf16, #tpu.memory_space<vmem>>, vector<8x16xbf16>
    tpu.vector_store %arg8[%c0_48, %c48_49], %98 {strides = array<i32>} : memref<8x64xbf16, #tpu.memory_space<vmem>>, vector<8x16xbf16>,
    %c0_50 = arith.constant 0 : index
    %c0_51 = arith.constant 0 : index
    %100 = vector.load %arg8[%c0_50, %c0_51] : memref<8x64xbf16, #tpu.memory_space<vmem>>, vector<8x64xbf16>
    %c0_52 = arith.constant 0 : index
    %c0_53 = arith.constant 0 : index
    %101 = vector.load %arg4[%c0_52, %c0_53] : memref<64x32xbf16, #tpu.memory_space<vmem>>, vector<64x32xbf16>
    %cst_54 = arith.constant dense<0.000000e+00> : vector<8x32xf32>
    %102 = tpu.matmul %100, %101, %cst_54 {dimension_numbers = #tpu.dot_dimension_numbers<[1], [0], [0], [1], [0, 0, 1, 1], [], []>} : vector<8x64xbf16>, vector<64x32xbf16>, vector<8x32xf32> -> vector<8x32xf32>
    %c0_55 = arith.constant 0 : index
    %c0_56 = arith.constant 0 : index
    %103 = vector.load %arg5[%c0_55, %c0_56] : memref<1x32xf32, #tpu.memory_space<vmem>>, vector<1x32xf32>
    %104 = vector.broadcast %103 : vector<1x32xf32> to vector<8x32xf32>
    %105 = arith.addf %102, %104 : vector<8x32xf32>
    %c0_57 = arith.constant 0 : index
    %c0_58 = arith.constant 0 : index
    %c0_59 = arith.constant 0 : index
    %106 = vector.load %arg6[%c0_57, %c0_58, %c0_59] : memref<1x8x32xf32, #tpu.memory_space<vmem>>, vector<1x8x32xf32>
    %107 = vector.shape_cast %106 : vector<1x8x32xf32> to vector<8x32xf32>
    %108 = vector.shape_cast %105 : vector<8x32xf32> to vector<1x8x32xf32>
    tpu.vector_store %arg6[%c0_57, %c0_58, %c0_59], %108 {strides = array<i32>} : memref<1x8x32xf32, #tpu.memory_space<vmem>>, vector<1x8x32xf32>,
    return
  }
  func.func @transform_0(%arg0: i32) -> (i32, i32, i32) {
    %c0_i32 = arith.constant 0 : i32
    %c0_i32_0 = arith.constant 0 : i32
    %c0_i32_1 = arith.constant 0 : i32
    return %arg0, %c0_i32, %c0_i32_0 : i32, i32, i32
  }
  func.func @transform_1(%arg0: i32) -> (i32, i32) {
    %c0_i32 = arith.constant 0 : i32
    %c0_i32_0 = arith.constant 0 : i32
    %c0_i32_1 = arith.constant 0 : i32
    return %c0_i32, %c0_i32_0 : i32, i32
  }
  func.func @transform_2(%arg0: i32) -> (i32, i32) {
    %c0_i32 = arith.constant 0 : i32
    %c0_i32_0 = arith.constant 0 : i32
    %c0_i32_1 = arith.constant 0 : i32
    return %c0_i32, %c0_i32_0 : i32, i32
  }
  func.func @transform_3(%arg0: i32) -> (i32, i32) {
    %c0_i32 = arith.constant 0 : i32
    %c0_i32_0 = arith.constant 0 : i32
    %c0_i32_1 = arith.constant 0 : i32
    return %c0_i32, %c0_i32_0 : i32, i32
  }
  func.func @transform_4(%arg0: i32) -> (i32, i32) {
    %c0_i32 = arith.constant 0 : i32
    %c0_i32_0 = arith.constant 0 : i32
    %c0_i32_1 = arith.constant 0 : i32
    return %c0_i32, %c0_i32_0 : i32, i32
  }
  func.func @transform_5(%arg0: i32) -> (i32, i32, i32) {
    %c0_i32 = arith.constant 0 : i32
    %c0_i32_0 = arith.constant 0 : i32
    %c0_i32_1 = arith.constant 0 : i32
    return %arg0, %c0_i32, %c0_i32_0 : i32, i32, i32
  }
}

</mosaic_0001>

<bundles_post_ra>
// kernel: tpu_custom_call.1
= control target key start
LH: loop header
LB: loop body
LE: loop exit
PB: predicated region body
PF: predicated region fallthrough
CT: control target
= control target key end

     0   :  { %10 = vsyncpa [#allocation5], 0  ;;  %s1208_s0 = inlined_call_operand.vmem [shape: f32[2,8,32], index: 0, kind: input, shape index: {}]   ;;  %s1209_s1 = inlined_call_operand.vmem [shape: bf16[32,192], index: 1, kind: input, shape index: {}]   ;;  %s1210_s2 = inlined_call_operand.hbm [shape: f32[1,192], index: 2, kind: input, shape index: {}]   ;;  %s1211_s3 = inlined_call_operand.vmem [shape: bf16[64,32], index: 3, kind: input, shape index: {}]   ;;  %s1212_s4 = inlined_call_operand.vmem [shape: f32[1,32], index: 4, kind: input, shape index: {}]   ;;  %s1213_s5 = inlined_call_operand.hbm [shape: f32[2,8,32], index: 5, kind: output, shape index: {}]  }
   0x1   :  { %11 = vsyncpa [#allocation6], 0 }
   0x2   :  { %13 = vsyncpa [#allocation6 + $0x1], 0  ;;  %s1040_s18 = smov 0   ;;  %s1042_s19 = smov 0  }
   0x3   :  { %s1044_s20 = smov 0   ;;  %s1046_s21 = smov 0  }
   0x4 LB: > { %s1061_s22 = sadd.s32 4294967295, %s999_s21   ;;  %s749_s23 = sadd.s32 4294967294, %s999_s21   ;;  %s999_s21 = sphi %s1046_s21, %s1219_s21   ;;  %s995_s20 = sphi %s1044_s20, %s1218_s20   ;;  %s991_s19 = sphi %s1042_s19, %s1217_s19   ;;  %s987_s18 = sphi %s1040_s18, %s1216_s18  }
   0x5   : > { %s1065_s24 = sadd.s32 1, %s999_s21   ;;  %s136_s25 = sadd.s32 1, %s995_s20 }
   0x6   : > { %s133_s26 = ssub.s32 %s999_s21, %s1065_s24  ;;  %p146_p0 = scmp.ne.s32.totalorder %s995_s20, %s991_s19 }
   0x7   : > { %p134_p1 = scmp.eq.s32.totalorder %s133_s26, 0  ;;  %p147_p2 = scmp.eq.s32.totalorder %s1061_s22, 1 }
   0x8   : > { %p152_p3 = scmp.ne.s32.totalorder %s991_s19, %s987_s18  ;;  %p153_p4 = scmp.eq.s32.totalorder %s749_s23, 1 }
   0x9   : > { %s1076_s27 = scalar_select %p134_p1, %s995_s20, %s136_s25  }
   0xa   : > { %p1078_p5 = por %p147_p2, %p146_p0  ;;  %p1082_p6 = por %p153_p4, %p152_p3 }
   0xb   : > { %p750_p7 = scmp.ge.s32.totalorder %s999_s21, 1  ;;  %p160_p8 = scmp.lt.s32.totalorder %s999_s21, 3 }
   0xc   : > { %p838_p9 = scmp.eq.s32.totalorder %s1061_s22, 0  ;;  %s175_s7 = sshll.u32 %s1210_s2, 4  ;;  %s176_s7 = int_to_ptr.hbm [resolvable:$true] %s175_s7 }
   0xd   : > { %p161_p10 = pnand %p750_p7, %p160_p8  ;;  %s1001_s8 = smov [#allocation4]  }
   0xe   : > { %s177_s9 = sshll.u32 %s1001_s8, 4  ;;  %s178_s9 = int_to_ptr.vmem [resolvable:$true] %s177_s9 }
   0xf   : > { %p830_p11 = pneg %p161_p10  ;;  %203 = sbr.rel (%p161_p10) target bundleno = 1503 (0x5df), region = 40 }
  0x11   : > { %p831_p12 = pnand %p838_p9, %p830_p11 }
  0x13   : > { %833 = dma.hbm_to_vmem [thread:$0]  (!%p831_p12), %s176_s7, 32, %s178_s9, [#allocation5]  }
  0x14   : > { %978 = dma.done.wait (%p838_p9), [#allocation5], 32  }
  0x15   : > { %980 = vsyncadd (%p838_p9), [#allocation5], 4294967264  ;;  %p231_p13 = scmp.lt.s32.totalorder %s1061_s22, 1  ;;  %vm237_vm0 = vcmask 261120   ;;  %v1002_v2 = vmov 32.0   ;;  %vm328_vm5 = vcmask 1043456  }
  0x16   : > { %883 = vrcp.f32 %v1002_v2  ;;  %v767_v14 = vld [vmem:[%s1209_s1 + $0x10] sm:$0xf]  ;;  %v807_v15 = vld [vmem:[%s1209_s1 + $0x14] sm:$0xf0]  ;;  %v806_v16 = vld [vmem:[%s1209_s1 + $0x14] sm:$0xf] }
  0x17   : > { %s232_s10 = scalar_select %p231_p13, %s1061_s22, 1  ;;  %v768_v17 = vor.u32 %v807_v15, %v767_v14  ;;  %v769_v18 = vld [vmem:[%s1209_s1 + $0x18] sm:$0xf0]  ;;  %v759_v19 = vld [vmem:[%s1209_s1] sm:$0xf]  ;;  %vm329_vm6 = vcmask 523268  }
  0x18   : > { %v805_v20 = vld [vmem:[%s1209_s1 + $0x4] sm:$0xf0]  ;;  %v772_v21 = vor.u32 %v806_v16, %v769_v18  ;;  %v804_v22 = vld [vmem:[%s1209_s1 + $0x4] sm:$0xf]  ;;  %v761_v23 = vld [vmem:[%s1209_s1 + $0x8] sm:$0xf0] }
  0x19   : > { %s756_s11 = sshll.u32 %s232_s10, 3  ;;  %307 = vmatpush.bf16.msra.mxu0 %v768_v17  ;;  %v760_v24 = vor.u32 %v805_v20, %v759_v19  ;;  %v764_v25 = vor.u32 %v804_v22, %v761_v23  ;;  %v272_v38 = vld [vmem:[#allocation4] sm:$0x3]  ;;  %vm330_vm7 = vmor %vm329_vm6, %vm328_vm5  ;;  %s1003_s15 = smov 32   ;;  %vm339_vm8 = vcmask 130048   ;;  %vm359_vm9 = vcmask 64512  }
  0x1a   : > { %s234_s14 = scalar_lea.vmem %s1208_s0, %s756_s11  ;;  %320 = vmatpush.bf16.msra.mxu1 %v772_v21  ;;  %v274_v39 = vperm.slane %v272_v38, 0  ;;  %v275_v40 = vperm.slane %v272_v38, 1  ;;  %s1004_s16 = smov 48   ;;  %vm392_vm10 = vcmask 125952   ;;  %vm463_vm11 = vcmask 257152  }
  0x1b   : > { %v236_v0 = vld [vmem:[%s234_s14] sm:$0xff]  ;;  %s1005_s17 = smov 64   ;;  %s1006_s23 = smov 112   ;;  %vm534_vm12 = vcmask 388352   ;;  %vm605_vm13 = vcmask 519552   ;;  %vm644_vm14 = vcmask 523264  }
  0x1c   : > { %v238_v1 = vsel %vm237_vm0, %v236_v0, 0.0  ;;  %v884_v3 = vpop.eup %883  ;;  %s1007_s25 = smov 16   ;;  %s1008_s26 = smov 96  }
  0x1d   : > { %239 = vadd.xlane.f32.xlu0 %v238_v1  ;;  %v242_v4 = vmul.f32 32.0, %v884_v3  ;;  %vm246_vm1 = vweird.f32 %v884_v3  ;;  %308 = vmatpush.bf16.msra.mxu0 %v760_v24  ;;  %s1009_s30 = smov 80   ;;  %s228_s14 = sand.u32 1, %s991_s19  }
  0x1e   : > { %321 = vmatpush.bf16.msra.mxu1 %v764_v25  ;;  %s953_s13 = scalar_lea.hbm %s1213_s5, 16 }
  0x1f   : > { %v243_v5 = vsub.f32 1.0, %v242_v4 }
  0x21   : > { %v244_v6 = vmul.f32 %v884_v3, %v243_v5 }
  0x23   : > { %v245_v7 = vadd.f32 %v884_v3, %v244_v6 }
  0x25   : > { %v247_v8 = vsel %vm246_vm1, %v884_v3, %v245_v7 }
  0x90   : > { %v240_v9 = vpop.xlane.xlu0 %239 }
  0x91   : > { %v248_v10 = vmul.f32 %v247_v8, %v240_v9 }
  0x93   : > { %v249_v11 = vsub.f32 %v236_v0, %v248_v10 }
  0x95   : > { %v250_v12 = vmul.f32 %v249_v11, %v249_v11 }
  0x97   : > { %v251_v13 = vsel %vm237_vm0, %v250_v12, 0.0 }
  0x98   : > { %252 = vadd.xlane.f32.xlu0 %v251_v13 }
 0x10b   : > { %v253_v26 = vpop.xlane.xlu0 %252 }
 0x10c   : > { %v254_v27 = vmul.f32 %v253_v26, %v247_v8 }
 0x10e   : > { %v255_v28 = vadd.f32 1e-05, %v254_v27 }
 0x110   : > { %885 = vrsqrt.f32 %v255_v28  ;;  %vm262_vm3 = vweird.f32 %v255_v28 }
 0x116   : > { %v886_v29 = vpop.eup %885 }
 0x117   : > { %v257_v30 = vmul.f32 %v886_v29, %v255_v28  ;;  %vm263_vm2 = vweird.f32 %v886_v29 }
 0x118   : > { %vm264_vm4 = vmor %vm262_vm3, %vm263_vm2 }
 0x119   : > { %v258_v31 = vmul.f32 %v886_v29, %v257_v30 }
 0x11b   : > { %v259_v32 = vmul.f32 0.5, %v258_v31 }
 0x11d   : > { %v260_v33 = vsub.f32 1.5, %v259_v32 }
 0x11f   : > { %v261_v34 = vmul.f32 %v886_v29, %v260_v33 }
 0x121   : > { %v265_v35 = vsel %vm264_vm4, %v886_v29, %v261_v34 }
 0x122   : > { %v266_v36 = vmul.f32 %v265_v35, %v249_v11 }
 0x124   : > { %v267_v37 = vpack.c.bf16 %v266_v36, %v266_v36 }
 0x126   : > { %773 = vmatmul.msk.bf16.vlgmr.msra.gmra.mxu0 %vm237_vm0, %v267_v37  ;;  %774 = vmatmul.msk.bf16.vlgmr.msra.gmra.mxu1 %vm237_vm0, %v267_v37 }
 0x1a3   : > { %v310_v41 = vpop.f32.mrf.mxu0  ;;  %v323_v42 = vpop.f32.mrf.mxu1 }
 0x1a4   : > { %v311_v43 = vadd.f32 %v310_v41, %v274_v39  ;;  %v324_v44 = vadd.f32 %v323_v42, %v275_v40 }
 0x1a6   : > { %v327_v45 = vpack.c.bf16 %v324_v44, %v311_v43 }
 0x1a8   : > { %331 = vst.msk [vmem:[#allocation2] sm:$0xff] %vm330_vm7, %v327_v45 }
 0x1ab   : > { %v312_v46 = vpop.f32.mrf.mxu0  ;;  %v325_v47 = vpop.f32.mrf.mxu1 }
 0x1af   : > { %v333_v48 = vld [vmem:[#allocation2 + $0x4] sm:$0xf]  ;;  %v332_v50 = vld [vmem:[#allocation2] sm:$0xf] }
 0x1b0   : > { %v817_v49 = vld [vmem:[#allocation2] sm:$0xff]   ;;  %v374_v51 = vsel %vm328_vm5, %v333_v48, 0  ;;  %v335_v53 = vunpack.c.l.b16 %v332_v50 }
 0x1b1   : > { %v818_v52 = vunpack.c.l.b16 %v817_v49  ;;  %383 = vmatpush.bf16.msra.mxu3 %v374_v51  ;;  %v815_v7 = vunpack.c.h.b16 %v817_v49 }
 0x1b2   : > { %v336_v55 = vpack.c.b16 %v335_v53, %v335_v53 }
 0x1b3   : > { %v469_v54 = vpack.c.b16 %v818_v52, %v818_v52  ;;  %v576_v8 = vpack.c.b16 %v815_v7, %v815_v7  ;;  %v811_v7 = vld [vmem:[%s1211_s3 + $0x18] sm:$0xff] }
 0x1b4   : > { %337 = vrot.lane.b32.xlu1 %v336_v55, %s1005_s17 }
 0x1b5   : > { %472 = vrot.lane.b32.xlu0 %v469_v54, %s1003_s15  ;;  %401 = vrot.lane.b32.xlu2 %v469_v54, %s1004_s16 }
 0x1bd   : > { %399 = vrot.lane.b32.xlu2 %v469_v54, %s1006_s23 }
 0x1c5   : > { %543 = vrot.lane.b32.xlu2 %v469_v54, %s1007_s25 }
 0x1cd   : > { %470 = vrot.lane.b32.xlu2 %v469_v54, %s1008_s26 }
 0x1d5   : > { %541 = vrot.lane.b32.xlu2 %v469_v54, %s1009_s30 }
 0x20f   : > { %v402_v56 = vpop.permute.xlu2 %401 }
 0x210   : > { %v407_v57 = vsel %vm339_vm8, %v402_v56, 0 }
 0x211   : > { %416 = vmatpush.bf16.xpose.msrb.mxu3 %v407_v57 }
 0x217   : > { %v400_v58 = vpop.permute.xlu2 %399 }
 0x21f   : > { %v544_v59 = vpop.permute.xlu2 %543 }
 0x220   : > { %v549_v20 = vsel %vm339_vm8, %v544_v59, 0 }
 0x226   : > { %v338_v61 = vpop.permute.xlu1 %337 }
 0x227   : > { %v473_v60 = vpop.permute.xlu0 %472  ;;  %v344_v63 = vsel %vm339_vm8, %v338_v61, 0  ;;  %v471_v0 = vpop.permute.xlu2 %470 }
 0x228   : > { %v478_v62 = vsel %vm339_vm8, %v473_v60, 0  ;;  %353 = vmatpush.bf16.xpose.msra.mxu2 %v344_v63 }
 0x229   : > { %487 = vmatpush.bf16.xpose.msrb.mxu1 %v478_v62 }
 0x22f   : > { %775 = vmatmul.msk.bf16.vlgmr.msra.gmra.mxu2 %vm339_vm8, %v332_v50  ;;  %v542_v9 = vpop.permute.xlu2 %541 }
 0x230   : > { %779 = vmatmul.msk.bf16.vlgmr.msrb.gmra.mxu1 %vm339_vm8, %v471_v0 }
 0x231   : > { %652 = vmatpush.bf16.msra.mxu1 %v811_v7 }
 0x2ad   : > { %v489_v1 = vpop.f32.mrf.mxu1 }
 0x2ae   : > { %v493_v2 = vsel %vm359_vm9, %v489_v1, -inf }
 0x2af   : > { %494 = vmax.xlane.f32.xlu2 %v493_v2 }
 0x2b2   : > { %v355_v3 = vpop.f32.mrf.mxu2 }
 0x2b3   : > { %v360_v5 = vsel %vm359_vm9, %v355_v3, -inf }
 0x2b4   : > { %361 = vmax.xlane.f32.xlu1 %v360_v5 }
 0x2b5   : > { %v491_v4 = vpop.f32.mrf.mxu1 }
 0x2ba   : > { %v357_v6 = vpop.f32.mrf.mxu2 }
 0x2c7   : > { %577 = vrot.lane.b32.xlu2 %v576_v8, %s1009_s30 }
 0x2cd   : > { %435 = vrot.lane.b32.xlu1 %v576_v8, %s1006_s23 }
 0x322   : > { %v495_v10 = vpop.xlane.xlu2 %494 }
 0x323   : > { %v496_v11 = vsub.f32 %v489_v1, %v495_v10  ;;  %v808_v10 = vld [vmem:[%s1211_s3] sm:$0xff] }
 0x325   : > { %v497_v12 = vmul.f32 1.442695, %v496_v11 }
 0x327   : > { %887 = vpow2.f32 %v497_v12  ;;  %v362_v13 = vpop.xlane.xlu1 %361 }
 0x328   : > { %v363_v14 = vsub.f32 %v355_v3, %v362_v13 }
 0x32a   : > { %v364_v15 = vmul.f32 1.442695, %v363_v14  ;;  %v578_v21 = vpop.permute.xlu2 %577 }
 0x32b   : > { %v583_v24 = vsel %vm328_vm5, %v578_v21, 0 }
 0x32c   : > { %889 = vpow2.f32 %v364_v15  ;;  %v882_v15 = vld [vmem:[%s1212_s4] ss:$0 sm:$0xff] }
 0x32d   : > { %v888_v16 = vpop.eup %887 }
 0x32e   : > { %v499_v17 = vsel %vm359_vm9, %v888_v16, 0.0  ;;  %v502_v44 = vpack.c.bf16 %v888_v16, %v888_v16 }
 0x32f   : > { %500 = vadd.xlane.f32.xlu2 %v499_v17 }
 0x332   : > { %v890_v18 = vpop.eup %889 }
 0x333   : > { %v369_v19 = vpack.c.bf16 %v890_v18, %v890_v18  ;;  %v366_v48 = vsel %vm359_vm9, %v890_v18, 0.0 }
 0x335   : > { %776 = vmatmul.msk.bf16.vlgmr.msra.gmra.mxu3 %vm359_vm9, %v369_v19 }
 0x336   : > { %558 = vmatpush.bf16.xpose.msra.mxu3 %v549_v20 }
 0x33f   : > { %v436_v22 = vpop.permute.xlu1 %435 }
 0x340   : > { %v441_v23 = vsel %vm328_vm5, %v436_v22, 0 }
 0x341   : > { %450 = vmatpush.bf16.msrb.mxu0 %v441_v23 }
 0x345   : > { %592 = vmatpush.bf16.msra.mxu0 %v583_v24  ;;  %777 = vmatmul.msk.bf16.vlgmr.msrb.gmra.mxu3 %vm339_vm8, %v400_v58 }
 0x355   : > { %781 = vmatmul.msk.bf16.vlgmr.msra.gmra.mxu3 %vm339_vm8, %v542_v9  ;;  %v809_v9 = vld [vmem:[%s1211_s3 + $0x8] sm:$0xff] }
 0x3a2   : > { %v501_v55 = vpop.xlane.xlu2 %500 }
 0x3b8   : > { %v385_v25 = vpop.f32.mrf.mxu3 }
 0x3c0   : > { %v387_v26 = vpop.f32.mrf.mxu3 }
 0x3c8   : > { %v418_v27 = vpop.f32.mrf.mxu3 }
 0x3c9   : > { %v422_v28 = vsel %vm359_vm9, %v418_v27, -inf }
 0x3ca   : > { %423 = vmax.xlane.f32.xlu0 %v422_v28 }
 0x3d0   : > { %v420_v29 = vpop.f32.mrf.mxu3 }
 0x3d8   : > { %v560_v30 = vpop.f32.mrf.mxu3 }
 0x3d9   : > { %v564_v31 = vsel %vm359_vm9, %v560_v30, -inf }
 0x3da   : > { %565 = vmax.xlane.f32.xlu1 %v564_v31 }
 0x3de   : > { %506 = vrot.lane.b32.xlu0 %v576_v8, %s1008_s26  ;;  %v810_v8 = vld [vmem:[%s1211_s3 + $0x10] sm:$0xff] }
 0x3df   : > { %653 = vmatpush.bf16.msra.mxu1 %v810_v8 }
 0x3e0   : > { %v562_v32 = vpop.f32.mrf.mxu3 }
 0x3e3   : > { %654 = vmatpush.bf16.msra.mxu1 %v809_v9 }
 0x3e7   : > { %655 = vmatpush.bf16.msra.mxu1 %v808_v10 }
 0x43d   : > { %v424_v33 = vpop.xlane.xlu0 %423 }
 0x43e   : > { %v425_v34 = vsub.f32 %v418_v27, %v424_v33 }
 0x440   : > { %v426_v35 = vmul.f32 1.442695, %v425_v34 }
 0x442   : > { %891 = vpow2.f32 %v426_v35 }
 0x448   : > { %v892_v36 = vpop.eup %891 }
 0x449   : > { %v428_v37 = vsel %vm359_vm9, %v892_v36, 0.0  ;;  %v431_v38 = vpack.c.bf16 %v892_v36, %v892_v36 }
 0x44a   : > { %429 = vadd.xlane.f32.xlu0 %v428_v37 }
 0x44b   : > { %778 = vmatmul.msk.bf16.vlgmr.msrb.gmra.mxu0 %vm359_vm9, %v431_v38 }
 0x44d   : > { %v566_v39 = vpop.xlane.xlu1 %565 }
 0x44e   : > { %v567_v40 = vsub.f32 %v560_v30, %v566_v39 }
 0x450   : > { %v568_v41 = vmul.f32 1.442695, %v567_v40  ;;  %v507_v42 = vpop.permute.xlu0 %506 }
 0x451   : > { %v512_v43 = vsel %vm328_vm5, %v507_v42, 0 }
 0x452   : > { %893 = vpow2.f32 %v568_v41  ;;  %521 = vmatpush.bf16.msrb.mxu2 %v512_v43 }
 0x455   : > { %780 = vmatmul.msk.bf16.vlgmr.msrb.gmra.mxu2 %vm359_vm9, %v502_v44 }
 0x458   : > { %v894_v45 = vpop.eup %893 }
 0x459   : > { %v573_v46 = vpack.c.bf16 %v894_v45, %v894_v45  ;;  %v570_v47 = vsel %vm359_vm9, %v894_v45, 0.0 }
 0x45a   : > { %571 = vadd.xlane.f32.xlu1 %v570_v47 }
 0x45b   : > { %782 = vmatmul.msk.bf16.vlgmr.msra.gmra.mxu0 %vm359_vm9, %v573_v46 }
 0x462   : > { %367 = vadd.xlane.f32.xlu1 %v366_v48 }
 0x4bd   : > { %v430_v49 = vpop.xlane.xlu0 %429 }
 0x4be   : > { %895 = vrcp.f32 %v430_v49 }
 0x4bf   : > { %897 = vrcp.f32 %v501_v55 }
 0x4c4   : > { %v896_v50 = vpop.eup %895 }
 0x4c5   : > { %v898_v58 = vpop.eup %897 }
 0x4c8   : > { %v452_v51 = vpop.f32.mrf.mxu0 }
 0x4c9   : > { %v457_v52 = vmul.f32 %v896_v50, %v452_v51 }
 0x4cb   : > { %v458_v53 = vpack.c.bf16 %v457_v52, %v457_v52 }
 0x4cd   : > { %460 = vrot.lane.b32.xlu1 %v458_v53, %s1007_s25  ;;  %v572_v54 = vpop.xlane.xlu1 %571 }
 0x4ce   : > { %899 = vrcp.f32 %v572_v54 }
 0x4d0   : > { %v454_v56 = vpop.f32.mrf.mxu0 }
 0x4d4   : > { %v900_v59 = vpop.eup %899 }
 0x4d5   : > { %v368_v57 = vpop.xlane.xlu1 %367 }
 0x4d6   : > { %901 = vrcp.f32 %v368_v57 }
 0x4d8   : > { %v523_v60 = vpop.f32.mrf.mxu2  ;;  %v594_v61 = vpop.f32.mrf.mxu0 }
 0x4d9   : > { %v528_v62 = vmul.f32 %v898_v58, %v523_v60  ;;  %v599_v63 = vmul.f32 %v900_v59, %v594_v61 }
 0x4db   : > { %v529_v0 = vpack.c.bf16 %v528_v62, %v528_v62  ;;  %v600_v1 = vpack.c.bf16 %v599_v63, %v599_v63 }
 0x4dc   : > { %v902_v2 = vpop.eup %901 }
 0x4dd   : > { %v390_v3 = vmul.f32 %v902_v2, %v385_v25  ;;  %602 = vrot.lane.b32.xlu2 %v600_v1, %s1004_s16  ;;  %531 = vrot.lane.b32.xlu0 %v529_v0, %s1003_s15  ;;  %s801_s15 = sshll.u32 %s1061_s22, 3  ;;  %s755_s16 = sshll.u32 %s228_s14, 3 }
 0x4de   : > { %s673_s25 = scalar_lea.hbm %s1213_s5, %s801_s15  ;;  %s230_s6 = scalar_lea.vmem [#allocation7], %s755_s16 }
 0x4df   : > { %v391_v4 = vpack.c.bf16 %v390_v3, %v390_v3  ;;  %s675_s7 = sshll.u32 %s230_s6, 4  ;;  %s677_s8 = sshll.u32 %s673_s25, 4  ;;  %s676_s7 = int_to_ptr.vmem [resolvable:$true] %s675_s7  ;;  %s678_s8 = int_to_ptr.hbm [resolvable:$true] %s677_s8 }
 0x4e0   : > { %v525_v5 = vpop.f32.mrf.mxu2  ;;  %v596_v6 = vpop.f32.mrf.mxu0  ;;  %s663_s22 = scalar_lea.sflag [#allocation6], %s228_s14  ;;  %s947_s9 = sshra.s32 %s678_s8, 4  ;;  %s948_s9 = int_to_ptr.hbm [resolvable:$true] %s947_s9 }
 0x4e1   : > { %393 = vst.msk [vmem:[#allocation3] sm:$0xf] %vm392_vm10, %v391_v4  ;;  %s949_s10 = scalar_lea.hbm %s948_s9, 8  ;;  %p954_p3 = scmp.lt.s32.totalorder %s948_s9, %s1213_s5 }
 0x4e2   : > { %p950_p0 = scmp.ne.s32.totalorder %s948_s9, %s949_s10  ;;  %p955_p4 = scmp.lt.s32.totalorder %s953_s13, %s949_s10 }
 0x4e4   : > { %p951_p1 = pnand %p950_p0, %p1078_p5  ;;  %p956_p7 = por %p955_p4, %p954_p3 }
 0x4e6   : > { %p952_p2 = pneg %p951_p1 }
 0x4e8   : > { %p957_p8 = pnand %p956_p7, %p952_p2 }
 0x537   : > { %v603_v13 = vpop.permute.xlu2 %602 }
 0x53f   : > { %v461_v11 = vpop.permute.xlu1 %460 }
 0x540   : > { %464 = vst.msk [vmem:[#allocation3] sm:$0xf] %vm463_vm11, %v461_v11 }
 0x54f   : > { %v532_v12 = vpop.permute.xlu0 %531 }
 0x550   : > { %535 = vst.msk [vmem:[#allocation3] sm:$0xf] %vm534_vm12, %v532_v12 }
 0x551   : > { %606 = vst.msk [vmem:[#allocation3] sm:$0xf] %vm605_vm13, %v603_v13 }
 0x558   : > { %v607_v14 = vld [vmem:[#allocation3] sm:$0xf] }
 0x559   : > { %799 = vmatmul.msk.bf16.vlgmr.msra.gmra.mxu1 %vm644_vm14, %v607_v14 }
 0x5d6   : > { %v657_v16 = vpop.f32.mrf.mxu1 }
 0x5d7   : > { %v658_v17 = vadd.f32 %v882_v15, %v657_v16 }
 0x5d9   : > { %661 = vst.msk [vmem:[%s230_s6] sm:$0xff] %vm237_vm0, %v658_v17 }
 0x5da   : > { %960 = shalt.err (!%p957_p8)
}
 0x5db   : > { %828 = dma.vmem_to_hbm [thread:$0]  (%p1078_p5), %s676_s7, 128, %s678_s8, %s663_s22  }
 0x5de   : > { %v659_v18 = vpop.f32.mrf.mxu1 }
 0x5df PF: > { %p840_p9 = scmp.ge.s32.totalorder %s999_s21, 2  ;;  %s689_s14 = sand.u32 1, %s987_s18  }
 0x5e0   : > { %s690_s17 = scalar_lea.sflag [#allocation6], %s689_s14 }
 0x5e1   : > { %p835_p10 = pnand %p840_p9, %p1082_p6 }
 0x5e3   : > { %p836_p11 = pneg %p835_p10 }
 0x5e5   : > { %982 = dma.done.wait (%p836_p11), %s690_s17, 128  }
 0x5e6   : > { %984 = vsyncadd (%p836_p11), %s690_s17, 4294967168  ;;  %p16_p12 = scmp.ge.s32.totalorder %s1065_s24, 4   ;;  %s1216_s18 = smov %s991_s19 }
 0x5e7   : > { %s1217_s19 = smov %s995_s20  ;;  %s1218_s20 = smov %s1076_s27 }
 0x5e8   : > { %s1219_s21 = smov %s1065_s24  ;;  %18 = sbr.rel (!%p16_p12) target bundleno = 4 (0x4), region = 80 }
 0x5ed   :  { %696 = vsyncpa [#allocation5], 1 }
 0x5ee   :  { %698 = vsyncpa [#allocation5 + $0x1], 1 }
 0x5ef   :  { %699 = vsyncpa [#allocation6], 1 }
 0x5f0   :  { %701 = vsyncpa [#allocation6 + $0x1], 1 }

</bundles_post_ra>
